<compile_context>
chip_gen: v7x
topology: tpu7x:2x2x1
jax: 0.10.0
libtpu: 0.0.40
codegen_flags: <defaults>
</compile_context>

<pallas_src>
import jax
import jax.numpy as jnp
from jax.experimental import pallas as pl
from jax.experimental.pallas import tpu as pltpu


def _round_up(a: int, b: int) -> int:
    return (a + b - 1) // b * b


def _choose_tile(dim: int, candidates, granularity: int) -> int:
    """Pick a hardware-aligned tile minimising padding (ties -> larger tile).

    The full (granularity-rounded) extent is also a candidate when it is not
    larger than the biggest candidate, so ragged dims like 384 or 300 use a
    single snug tile instead of padding up to the next power-of-two tile.
    """
    full = _round_up(dim, granularity)
    usable = [c for c in candidates if c <= full]
    if full <= max(candidates):
        usable.append(full)
    if not usable:
        return full
    return min(usable, key=lambda c: (_round_up(dim, c), -c))


def _linear_kernel(x_ref, w_ref, o_ref, acc_ref):
    """One (tm, tn) output tile; reduction over K on grid axis 2. No bias."""
    k = pl.program_id(2)

    @pl.when(k == 0)
    def _():
        acc_ref[...] = jnp.zeros_like(acc_ref)

    # x tile: (tm, tk); w tile already (tk, tn) -> straight MXU feed.
    acc_ref[...] += jnp.dot(
        x_ref[...], w_ref[...], preferred_element_type=jnp.float32
    )

    @pl.when(k == pl.num_programs(2) - 1)
    def _():
        o_ref[...] = acc_ref[...].astype(o_ref.dtype)


def _linear_bias_kernel(x_ref, w_ref, b_ref, o_ref, acc_ref):
    """Same as _linear_kernel but adds the (f32) bias in the epilogue."""
    k = pl.program_id(2)

    @pl.when(k == 0)
    def _():
        acc_ref[...] = jnp.zeros_like(acc_ref)

    acc_ref[...] += jnp.dot(
        x_ref[...], w_ref[...], preferred_element_type=jnp.float32
    )

    @pl.when(k == pl.num_programs(2) - 1)
    def _():
        o_ref[...] = (acc_ref[...] + b_ref[...].astype(jnp.float32)).astype(
            o_ref.dtype
        )


def _matmul_padded(x2d, w_t, bias2d, out_dtype, M, N, K, Mp, Np, Kp, tm, tn, tk):
    grid = (Mp // tm, Np // tn, Kp // tk)

    in_specs = [
        pl.BlockSpec((tm, tk), lambda i, j, k: (i, k)),  # x   (Mp, Kp)
        pl.BlockSpec((tk, tn), lambda i, j, k: (k, j)),  # W^T (Kp, Np)
    ]
    args = [x2d, w_t]
    if bias2d is not None:
        in_specs.append(pl.BlockSpec((1, tn), lambda i, j, k: (0, j)))
        args.append(bias2d)
        kernel = _linear_bias_kernel
    else:
        kernel = _linear_kernel

    in_bytes = jnp.dtype(x2d.dtype).itemsize
    cost = pl.CostEstimate(
        flops=2 * M * N * K,
        transcendentals=0,
        bytes_accessed=(M * K + K * N) * in_bytes
        + M * N * jnp.dtype(out_dtype).itemsize,
    )

    return pl.pallas_call(
        kernel,
        out_shape=jax.ShapeDtypeStruct((Mp, Np), out_dtype),
        grid_spec=pltpu.PrefetchScalarGridSpec(
            num_scalar_prefetch=0,
            grid=grid,
            in_specs=in_specs,
            out_specs=pl.BlockSpec((tm, tn), lambda i, j, k: (i, j)),
            scratch_shapes=[pltpu.VMEM((tm, tn), jnp.float32)],
        ),
        compiler_params=pltpu.CompilerParams(
            dimension_semantics=("parallel", "parallel", "arbitrary"),
        ),
        cost_estimate=cost,
    )(*args)


class ReplicatedLinear:
    """TPU Pallas equivalent of nanovllm's ReplicatedLinear: y = F.linear(x, W, b).

    The (out, in) weight is transposed to (K, N), optionally cast to
    `compute_dtype`, and padded to the tile grid ONCE at construction, so each
    call only pays x / output traffic around the GEMM kernel.
    """

    def __init__(self, weight, bias=None, compute_dtype=None):
        out_size, in_size = weight.shape
        self.input_size = in_size
        self.output_size = out_size
        self.compute_dtype = compute_dtype

        # N / K tiles depend only on the weight shape -> decided here, once.
        self.tn = _choose_tile(out_size, (512, 256), 128)
        self.tk = _choose_tile(in_size, (1024, 512, 256), 128)
        self.Np = _round_up(out_size, self.tn)
        self.Kp = _round_up(in_size, self.tk)

        w_t = jnp.transpose(weight)  # (K, N): direct MXU feed, no in-kernel .T
        if compute_dtype is not None:
            w_t = w_t.astype(compute_dtype)
        if (self.Kp, self.Np) != (in_size, out_size):
            w_t = jnp.pad(w_t, ((0, self.Kp - in_size), (0, self.Np - out_size)))
        self.w_t = w_t

        if bias is not None:
            b2d = bias.reshape(1, out_size).astype(jnp.float32)
            if self.Np != out_size:
                b2d = jnp.pad(b2d, ((0, 0), (0, self.Np - out_size)))
            self.bias2d = b2d
        else:
            self.bias2d = None

    def __call__(self, x):
        K, N = self.input_size, self.output_size
        Kp, Np = self.Kp, self.Np
        tn, tk = self.tn, self.tk
        orig_shape = x.shape
        out_dtype = x.dtype

        x2d = x.reshape(-1, K)
        if self.compute_dtype is not None:
            x2d = x2d.astype(self.compute_dtype)
        M = x2d.shape[0]

        # Sublane granularity depends on dtype packing (f32:8, bf16:16, i8:32).
        sub = max(8, 32 // jnp.dtype(x2d.dtype).itemsize)
        tm = _choose_tile(M, (512, 256, 128, 64), sub)
        Mp = _round_up(M, tm)

        # v7x megacore: make sure the "parallel" (i, j) axes expose >= 2 blocks
        # when the problem is big enough, so both TensorCores get work.
        if Mp // tm == 1 and Np // tn == 1:
            if tn >= 512:
                tn //= 2  # Np == old tn -> still a multiple of the new tn
            elif tm % (2 * sub) == 0 and M > tm // 2:
                tm //= 2
                Mp = _round_up(M, tm)

        if (Mp, Kp) != (M, K):
            x2d = jnp.pad(x2d, ((0, Mp - M), (0, Kp - K)))

        out = _matmul_padded(
            x2d, self.w_t, self.bias2d, out_dtype,
            M, N, K, Mp, Np, Kp, tm, tn, tk,
        )
        if (Mp, Np) != (M, N):
            out = out[:M, :N]
        return out.reshape(*orig_shape[:-1], N)


def replicated_linear(x, weight, bias=None, compute_dtype=None):
    """One-shot convenience wrapper (F.linear semantics).

    For repeated calls, build ReplicatedLinear once so the weight
    transpose/pad is not re-done per call.
    """
    return ReplicatedLinear(weight, bias, compute_dtype)(x)


# TODO(synk): weight_loader / torch.distributed plumbing has no Pallas
# equivalent; only the tp_size=1 replicated forward is implemented.


if __name__ == "__main__":
    key = jax.random.PRNGKey(0)
    kx, kw, kb, kx2, kw2, kx3, kw3, kb3 = jax.random.split(key, 8)

    # ---- Case 1: bias, nicely shaped (matches the nn.Module config) ----
    input_size, output_size, seq = 256, 128, 8
    x = jax.random.normal(kx, (seq, input_size), dtype=jnp.float32)
    weight = jax.random.normal(kw, (output_size, input_size), dtype=jnp.float32) * 0.02
    bias = jax.random.normal(kb, (output_size,), dtype=jnp.float32) * 0.1

    layer = ReplicatedLinear(weight, bias)           # transpose/pad happens once
    y = jax.block_until_ready(layer(x))
    ref = x @ weight.T + bias
    assert y.shape == (seq, output_size)
    assert jnp.allclose(y, ref, atol=1e-4, rtol=1e-4), "mismatch vs reference (bias)"

    # ---- Case 2: no bias, ragged shapes + leading dims (padding path) ----
    in2, out2, m2 = 200, 100, 5
    x2 = jax.random.normal(kx2, (2, m2, in2), dtype=jnp.float32)
    w2 = jax.random.normal(kw2, (out2, in2), dtype=jnp.float32) * 0.02

    layer2 = ReplicatedLinear(w2, None)
    y2 = jax.block_until_ready(layer2(x2))
    ref2 = jnp.einsum("bmi,oi->bmo", x2, w2)
    assert y2.shape == (2, m2, out2)
    assert jnp.allclose(y2, ref2, atol=1e-4, rtol=1e-4), "mismatch vs reference (no bias)"

    # ---- Case 3: bf16 compute path (f32 accumulator, f32 bias add) ----
    in3, out3, m3 = 256, 384, 32
    x3 = jax.random.normal(kx3, (m3, in3), dtype=jnp.float32)
    w3 = jax.random.normal(kw3, (out3, in3), dtype=jnp.float32) * 0.02
    b3 = jax.random.normal(kb3, (out3,), dtype=jnp.float32) * 0.1

    layer3 = ReplicatedLinear(w3, b3, compute_dtype=jnp.bfloat16)
    y3 = jax.block_until_ready(layer3(x3))
    ref3 = x3 @ w3.T + b3
    assert y3.shape == (m3, out3)
    assert jnp.allclose(y3, ref3, atol=5e-2, rtol=5e-2), "mismatch vs reference (bf16)"

    print("KERNEL_OK")
</pallas_src>

<mosaic_0001>
module attributes {stable_mosaic.version = 11 : i64} {
  func.func @_linear_bias_kernel(%arg0: i32, %arg1: i32, %arg2: i32, %arg3: memref<8x256xf32, #tpu.memory_space<vmem>>, %arg4: memref<256x128xf32, #tpu.memory_space<vmem>>, %arg5: memref<1x128xf32, #tpu.memory_space<vmem>>, %arg6: memref<8x128xf32, #tpu.memory_space<vmem>>, %arg7: memref<8x128xf32, #tpu.memory_space<vmem>>) attributes {dimension_semantics = [#tpu.dimension_semantics<parallel>, #tpu.dimension_semantics<parallel>, #tpu.dimension_semantics<arbitrary>], iteration_bounds = array<i64: 1, 1, 1>, scalar_prefetch = 0 : i64, scratch_operands = 1 : i64, tpu.core_type = #tpu.core_type<tc>, window_params = [{transform_indices = @transform_0, window_bounds = array<i64: 8, 256>}, {transform_indices = @transform_1, window_bounds = array<i64: 256, 128>}, {transform_indices = @transform_2, window_bounds = array<i64: 1, 128>}, {transform_indices = @transform_3, window_bounds = array<i64: 8, 128>}]} {
    %c0_i32 = arith.constant 0 : i32
    %0 = arith.cmpi eq, %arg2, %c0_i32 : i32
    %1 = arith.extui %0 : i1 to i32
    %c0_i32_0 = arith.constant 0 : i32
    %2 = arith.cmpi ne, %1, %c0_i32_0 : i32
    scf.if %2 {
      %cst_10 = arith.constant 0.000000e+00 : f32
      %12 = vector.broadcast %cst_10 : f32 to vector<8x128xf32>
      %c0_11 = arith.constant 0 : index
      %c0_12 = arith.constant 0 : index
      %13 = vector.load %arg7[%c0_11, %c0_12] : memref<8x128xf32, #tpu.memory_space<vmem>>, vector<8x128xf32>
      tpu.vector_store %arg7[%c0_11, %c0_12], %12 {strides = array<i32>} : memref<8x128xf32, #tpu.memory_space<vmem>>, vector<8x128xf32>,
    } else {
    }
    %c0 = arith.constant 0 : index
    %c0_1 = arith.constant 0 : index
    %3 = vector.load %arg7[%c0, %c0_1] : memref<8x128xf32, #tpu.memory_space<vmem>>, vector<8x128xf32>
    %c0_2 = arith.constant 0 : index
    %c0_3 = arith.constant 0 : index
    %4 = vector.load %arg3[%c0_2, %c0_3] : memref<8x256xf32, #tpu.memory_space<vmem>>, vector<8x256xf32>
    %c0_4 = arith.constant 0 : index
    %c0_5 = arith.constant 0 : index
    %5 = vector.load %arg4[%c0_4, %c0_5] : memref<256x128xf32, #tpu.memory_space<vmem>>, vector<256x128xf32>
    %cst = arith.constant dense<0.000000e+00> : vector<8x128xf32>
    %6 = tpu.matmul %4, %5, %cst {dimension_numbers = #tpu.dot_dimension_numbers<[1], [0], [0], [1], [0, 0, 1, 1], [], []>} : vector<8x256xf32>, vector<256x128xf32>, vector<8x128xf32> -> vector<8x128xf32>
    %7 = arith.addf %3, %6 : vector<8x128xf32>
    %c0_6 = arith.constant 0 : index
    %c0_7 = arith.constant 0 : index
    %8 = vector.load %arg7[%c0_6, %c0_7] : memref<8x128xf32, #tpu.memory_space<vmem>>, vector<8x128xf32>
    tpu.vector_store %arg7[%c0_6, %c0_7], %7 {strides = array<i32>} : memref<8x128xf32, #tpu.memory_space<vmem>>, vector<8x128xf32>,
    %c0_i32_8 = arith.constant 0 : i32
    %9 = arith.cmpi eq, %arg2, %c0_i32_8 : i32
    %10 = arith.extui %9 : i1 to i32
    %c0_i32_9 = arith.constant 0 : i32
    %11 = arith.cmpi ne, %10, %c0_i32_9 : i32
    scf.if %11 {
      %c0_10 = arith.constant 0 : index
      %c0_11 = arith.constant 0 : index
      %12 = vector.load %arg7[%c0_10, %c0_11] : memref<8x128xf32, #tpu.memory_space<vmem>>, vector<8x128xf32>
      %c0_12 = arith.constant 0 : index
      %c0_13 = arith.constant 0 : index
      %13 = vector.load %arg5[%c0_12, %c0_13] : memref<1x128xf32, #tpu.memory_space<vmem>>, vector<1x128xf32>
      %14 = vector.broadcast %13 : vector<1x128xf32> to vector<8x128xf32>
      %15 = arith.addf %12, %14 : vector<8x128xf32>
      %c0_14 = arith.constant 0 : index
      %c0_15 = arith.constant 0 : index
      %16 = vector.load %arg6[%c0_14, %c0_15] : memref<8x128xf32, #tpu.memory_space<vmem>>, vector<8x128xf32>
      tpu.vector_store %arg6[%c0_14, %c0_15], %15 {strides = array<i32>} : memref<8x128xf32, #tpu.memory_space<vmem>>, vector<8x128xf32>,
    } else {
    }
    return
  }
  func.func @transform_0(%arg0: i32, %arg1: i32, %arg2: i32) -> (i32, i32) {
    %c0_i32 = arith.constant 0 : i32
    return %arg0, %arg2 : i32, i32
  }
  func.func @transform_1(%arg0: i32, %arg1: i32, %arg2: i32) -> (i32, i32) {
    %c0_i32 = arith.constant 0 : i32
    return %arg2, %arg1 : i32, i32
  }
  func.func @transform_2(%arg0: i32, %arg1: i32, %arg2: i32) -> (i32, i32) {
    %c0_i32 = arith.constant 0 : i32
    %c0_i32_0 = arith.constant 0 : i32
    return %c0_i32, %arg1 : i32, i32
  }
  func.func @transform_3(%arg0: i32, %arg1: i32, %arg2: i32) -> (i32, i32) {
    %c0_i32 = arith.constant 0 : i32
    return %arg0, %arg1 : i32, i32
  }
}

</mosaic_0001>

<bundles_post_ra>
// kernel: tpu_custom_call.1
= control target key start
LH: loop header
LB: loop body
LE: loop exit
PB: predicated region body
PF: predicated region fallthrough
CT: control target
= control target key end

     0   :  { %8 = vsyncpa [#allocation4], 0  ;;  %s398_s0 = inlined_call_operand.hbm [shape: f32[8,256], index: 0, kind: input, shape index: {}]   ;;  %s399_s1 = inlined_call_operand.hbm [shape: f32[256,128], index: 1, kind: input, shape index: {}]   ;;  %s400_s2 = inlined_call_operand.vmem [shape: f32[1,128], index: 2, kind: input, shape index: {}]   ;;  %s401_s3 = inlined_call_operand.hbm [shape: f32[8,128], index: 3, kind: output, shape index: {}]  }
   0x1   :  { %9 = vsyncpa [#allocation7], 0 }
   0x2   :  { %10 = vsyncpa [#allocation5], 0  ;;  %s327_s12 = smov [#allocation3]   ;;  %s328_s14 = smov [#allocation6]  }
   0x3   :  { %s17_s13 = sshll.u32 %s327_s12, 4  ;;  %s26_s15 = sshll.u32 %s328_s14, 4  ;;  %s18_s13 = int_to_ptr.vmem [resolvable:$true] %s17_s13  ;;  %s352_s15 = int_to_ptr.vmem [resolvable:$true] %s26_s15 }
   0x4   :  { %s255_s18 = scalar_lea.hbm %s398_s0, 256 }
   0x5   :  { %p256_p0 = scmp.ne.s32.totalorder %s398_s0, %s255_s18  ;;  %p259_p1 = scmp.lt.u32.totalorder %s255_s18, %s398_s0 }
   0x7   :  { %p261_p2 = pnand %p259_p1, %p256_p0 }
   0x9   :  { %264 = shalt.err (!%p261_p2)
}
   0xa   :  { %s265_s23 = scalar_lea.vmem %s18_s13, 256  ;;  %p270_p4 = scmp.lt.s32.totalorder %s18_s13, %s18_s13 }
   0xb   :  { %p266_p3 = scmp.ne.s32.totalorder %s18_s13, %s265_s23  ;;  %p271_p5 = scmp.lt.s32.totalorder %s265_s23, %s265_s23 }
   0xd   :  { %p272_p6 = por %p271_p5, %p270_p4 }
   0xf   :  { %p273_p7 = pnand %p272_p6, %p266_p3 }
  0x11   :  { %276 = shalt.err (!%p273_p7)
}
  0x12   :  { %20 = dma.hbm_to_vmem [thread:$0]  %s398_s0, 256, %s18_s13, [#allocation4]  }
  0x13   :  { %s277_s28 = scalar_lea.hbm %s399_s1, 4096 }
  0x14   :  { %p278_p8 = scmp.ne.s32.totalorder %s399_s1, %s277_s28  ;;  %p281_p9 = scmp.lt.u32.totalorder %s277_s28, %s399_s1 }
  0x16   :  { %p283_p10 = pnand %p281_p9, %p278_p8 }
  0x18   :  { %286 = shalt.err (!%p283_p10)
}
  0x19   :  { %s287_s6 = scalar_lea.vmem %s352_s15, 4096  ;;  %p292_p12 = scmp.lt.s32.totalorder %s352_s15, %s352_s15 }
  0x1a   :  { %p288_p11 = scmp.ne.s32.totalorder %s352_s15, %s287_s6  ;;  %p293_p13 = scmp.lt.s32.totalorder %s287_s6, %s287_s6 }
  0x1c   :  { %p294_p0 = por %p293_p13, %p292_p12 }
  0x1e   :  { %p295_p1 = pnand %p294_p0, %p288_p11 }
  0x20   :  { %298 = shalt.err (!%p295_p1)
}
  0x21   :  { %s329_s0 = smov 128   ;;  %s330_s7 = smov 8  }
  0x22   :  { %32 = dma.hbm_to_vmem [thread:$0]  %s399_s1, 4096, %s352_s15, [#allocation7], %s329_s0, %s329_s0, %s330_s7  }
  0x23   :  { %321 = dma.done.wait [#allocation4], 256  }
  0x24   :  { %322 = vsyncadd [#allocation4], 4294967040 }
  0x25   :  { %323 = dma.done.wait [#allocation7], 4096  }
  0x26   :  { %324 = vsyncadd [#allocation7], 4294963200  ;;  %v65_v0 = vld [vmem:[#allocation6 + $0x80] sm:$0xff]  ;;  %v66_v1 = vld [vmem:[#allocation6 + $0x88] sm:$0xff]  ;;  %s331_s11 = smov [#allocation8]  }
  0x27   :  { %v49_v2 = vld [vmem:[#allocation6] sm:$0xff]  ;;  %v218_v3 = vpack.c.bf16 %v66_v1, %v65_v0  ;;  %v50_v4 = vld [vmem:[#allocation6 + $0x8] sm:$0xff]  ;;  %v67_v5 = vld [vmem:[#allocation6 + $0x90] sm:$0xff]  ;;  %s172_s12 = sshll.u32 %s331_s11, 4  ;;  %s173_s12 = int_to_ptr.vmem [resolvable:$true] %s172_s12 }
  0x28   :  { %v68_v6 = vld [vmem:[#allocation6 + $0x98] sm:$0xff]  ;;  %v220_v7 = vpack.c.bf16 %v50_v4, %v49_v2  ;;  %v51_v9 = vld [vmem:[#allocation6 + $0x10] sm:$0xff]  ;;  %v69_v11 = vld [vmem:[#allocation6 + $0xa0] sm:$0xff]  ;;  %s299_s13 = scalar_lea.vmem %s173_s12, 128  ;;  %p304_p3 = scmp.lt.s32.totalorder %s173_s12, %s173_s12 }
  0x29   :  { %v222_v8 = vpack.c.bf16 %v68_v6, %v67_v5  ;;  %v52_v10 = vld [vmem:[#allocation6 + $0x18] sm:$0xff]  ;;  %219 = vmatprep.subr.bf16.mxu0 %v218_v3  ;;  %v70_v12 = vld [vmem:[#allocation6 + $0xa8] sm:$0xff]  ;;  %v53_v15 = vld [vmem:[#allocation6 + $0x20] sm:$0xff]  ;;  %p300_p2 = scmp.ne.s32.totalorder %s173_s12, %s299_s13  ;;  %p305_p4 = scmp.lt.s32.totalorder %s299_s13, %s299_s13 }
  0x2a   :  { %221 = vmatpush3.bf16.msra.mxu0 %v220_v7  ;;  %v224_v13 = vpack.c.bf16 %v52_v10, %v51_v9  ;;  %v226_v14 = vpack.c.bf16 %v70_v12, %v69_v11  ;;  %v54_v16 = vld [vmem:[#allocation6 + $0x28] sm:$0xff]  ;;  %v71_v17 = vld [vmem:[#allocation6 + $0xb0] sm:$0xff]  ;;  %v72_v18 = vld [vmem:[#allocation6 + $0xb8] sm:$0xff] }
  0x2b   :  { %223 = vmatprep.subr.bf16.mxu0 %v222_v8  ;;  %v228_v19 = vpack.c.bf16 %v54_v16, %v53_v15  ;;  %v230_v20 = vpack.c.bf16 %v72_v18, %v71_v17  ;;  %v55_v21 = vld [vmem:[#allocation6 + $0x30] sm:$0xff]  ;;  %v56_v22 = vld [vmem:[#allocation6 + $0x38] sm:$0xff]  ;;  %v73_v23 = vld [vmem:[#allocation6 + $0xc0] sm:$0xff]  ;;  %p306_p5 = por %p305_p4, %p304_p3 }
  0x2c   :  { %v74_v24 = vld [vmem:[#allocation6 + $0xc8] sm:$0xff]  ;;  %v48_v25 = vld [vmem:[#allocation3 + $0x8] sm:$0xff]  ;;  %v232_v26 = vpack.c.bf16 %v56_v22, %v55_v21  ;;  %v57_v28 = vld [vmem:[#allocation6 + $0x40] sm:$0xff] }
  0x2d   :  { %145 = vmatprep.mubr.f32.mxu0 %v48_v25  ;;  %v234_v27 = vpack.c.bf16 %v74_v24, %v73_v23  ;;  %v58_v29 = vld [vmem:[#allocation6 + $0x48] sm:$0xff]  ;;  %v75_v30 = vld [vmem:[#allocation6 + $0xd0] sm:$0xff]  ;;  %v76_v31 = vld [vmem:[#allocation6 + $0xd8] sm:$0xff]  ;;  %p307_p6 = pnand %p306_p5, %p300_p2 }
  0x2e   :  { %225 = vmatpush3.bf16.msra.mxu0 %v224_v13  ;;  %v236_v32 = vpack.c.bf16 %v58_v29, %v57_v28  ;;  %v238_v33 = vpack.c.bf16 %v76_v31, %v75_v30  ;;  %v59_v34 = vld [vmem:[#allocation6 + $0x50] sm:$0xff]  ;;  %v60_v35 = vld [vmem:[#allocation6 + $0x58] sm:$0xff]  ;;  %v77_v36 = vld [vmem:[#allocation6 + $0xe0] sm:$0xff] }
  0x2f   :  { %227 = vmatprep.subr.bf16.mxu0 %v226_v14  ;;  %v78_v37 = vld [vmem:[#allocation6 + $0xe8] sm:$0xff]  ;;  %v240_v38 = vpack.c.bf16 %v60_v35, %v59_v34  ;;  %v61_v40 = vld [vmem:[#allocation6 + $0x60] sm:$0xff]  ;;  %v79_v42 = vld [vmem:[#allocation6 + $0xf0] sm:$0xff] }
  0x30   :  { %v242_v39 = vpack.c.bf16 %v78_v37, %v77_v36  ;;  %v62_v41 = vld [vmem:[#allocation6 + $0x68] sm:$0xff]  ;;  %v80_v43 = vld [vmem:[#allocation6 + $0xf8] sm:$0xff]  ;;  %v63_v46 = vld [vmem:[#allocation6 + $0x70] sm:$0xff] }
  0x31   :  { %v244_v44 = vpack.c.bf16 %v62_v41, %v61_v40  ;;  %v246_v45 = vpack.c.bf16 %v80_v43, %v79_v42  ;;  %v64_v47 = vld [vmem:[#allocation6 + $0x78] sm:$0xff]  ;;  %v47_v49 = vld [vmem:[#allocation3] sm:$0xff] }
  0x32   :  { %229 = vmatpush3.bf16.msra.mxu0 %v228_v19  ;;  %v248_v48 = vpack.c.bf16 %v64_v47, %v63_v46  ;;  %v182_v52 = vld [vmem:[%s400_s2] ss:$0 sm:$0xff] }
  0x33   :  { %231 = vmatprep.subr.bf16.mxu0 %v230_v20 }
  0x36   :  { %233 = vmatpush3.bf16.msra.mxu0 %v232_v26 }
  0x37   :  { %235 = vmatprep.subr.bf16.mxu0 %v234_v27 }
  0x3a   :  { %237 = vmatpush3.bf16.msra.mxu0 %v236_v32 }
  0x3b   :  { %239 = vmatprep.subr.bf16.mxu0 %v238_v33 }
  0x3e   :  { %241 = vmatpush3.bf16.msra.mxu0 %v240_v38 }
  0x3f   :  { %243 = vmatprep.subr.bf16.mxu0 %v242_v39 }
  0x42   :  { %245 = vmatpush3.bf16.msra.mxu0 %v244_v44 }
  0x43   :  { %247 = vmatprep.subr.bf16.mxu0 %v246_v45 }
  0x46   :  { %249 = vmatpush3.bf16.msra.mxu0 %v248_v48 }
  0x49   :  { %146 = vmatmul.mubr.f32.vlgmr.msra.gmra.mrb[0].mxu0 %v47_v49 }
 0x11c   :  { %v215_v50 = vpop.f32.mrb[0].mxu0 }
 0x11d   :  { %v216_v51 = vpop.f32.mrb[1].mxu0 }
 0x11e   :  { %v217_v53 = vadd.f32 %v216_v51, %v215_v50 }
 0x120   :  { %v164_v54 = vadd.f32 %v217_v53, %v182_v52 }
 0x122   :  { %165 = vst [vmem:[#allocation8] sm:$0xff] %v164_v54 }
 0x123   :  { %310 = shalt.err (!%p307_p6)
}
 0x124   :  { %s311_s16 = scalar_lea.hbm %s401_s3, 128 }
 0x125   :  { %p312_p7 = scmp.ne.s32.totalorder %s401_s3, %s311_s16  ;;  %p315_p8 = scmp.lt.u32.totalorder %s311_s16, %s401_s3 }
 0x127   :  { %p317_p9 = pnand %p315_p8, %p312_p7 }
 0x129   :  { %320 = shalt.err (!%p317_p9)
}
 0x12a   :  { %175 = dma.vmem_to_hbm [thread:$0]  %s173_s12, 128, %s401_s3, [#allocation5]  }
 0x12b   :  { %325 = dma.done.wait [#allocation5], 128  }
 0x12c   :  { %326 = vsyncadd [#allocation5], 4294967168 }
 0x12d   :  { %179 = vsyncpa [#allocation4], 1 }
 0x12e   :  { %180 = vsyncpa [#allocation7], 1 }
 0x12f   :  { %181 = vsyncpa [#allocation5], 1 }

</bundles_post_ra>
